<compile_context>
chip_gen: v6e
topology: v6e:2x2x1
jax: 0.10.0
libtpu: 0.0.40
codegen_flags: <defaults>
</compile_context>

<pallas_src>
import jax
import jax.numpy as jnp
import numpy as np
from jax.experimental import pallas as pl
from jax.experimental.pallas import tpu as pltpu


def _dense_baens_kernel(x_ref, u_ref, b_ref, out_ref):
    # Per grid step g (Nb ensemble members at once):
    #   x_ref:   (Nb, B, D1)
    #   u_ref:   (Nb, D1, D2)
    #   b_ref:   (Nb, B, D2)
    #   out_ref: (Nb, B, D2)
    x = x_ref[...]
    u = u_ref[...]
    if x.dtype != u.dtype:
        # Feed the MXU in the (narrower) weight dtype; accumulate in f32.
        x = x.astype(u.dtype)
    acc = jnp.einsum('nbd,nde->nbe', x, u,
                     preferred_element_type=jnp.float32)          # (Nb, B, D2) f32
    out_ref[...] = (acc + b_ref[...].astype(jnp.float32)).astype(out_ref.dtype)


def prepare_params(U, bias, *, weight_dtype=None):
    """One-time parameter prep, hoisted out of the per-call path.

    Optionally stores U in a narrower dtype (e.g. jnp.bfloat16) to halve the
    dominant HBM term; bias is kept as-is so the epilogue add stays f32.
    """
    if weight_dtype is not None:
        U = U.astype(weight_dtype)
    return U, bias


def _choose_num_steps(N, per_member_bytes, vmem_budget_bytes):
    """Smallest divisor-of-N step count (>=2 when possible, for v7x's 2 TCs)
    whose double-buffered per-step working set fits the VMEM budget."""
    preferred = 2 if (N > 1 and N % 2 == 0) else 1
    for g in range(preferred, N + 1):
        if N % g != 0:
            continue
        nb = N // g
        if 2 * nb * per_member_bytes <= vmem_budget_bytes:
            return g
    return N


def dense_baens(x, U, bias):
    """x: (N, B, D1), U: (N, D1, D2), bias: (N, B, D2) -> (N, B, D2)."""
    N, B, D1 = x.shape
    assert U.shape[0] == N and U.shape[1] == D1, U.shape
    D2 = U.shape[2]
    assert bias.shape == (N, B, D2), bias.shape

    out_dtype = x.dtype
    itemsize = lambda dt: jnp.dtype(dt).itemsize
    per_member_bytes = (B * D1 * itemsize(x.dtype)
                        + D1 * D2 * itemsize(U.dtype)
                        + B * D2 * itemsize(bias.dtype)
                        + B * D2 * itemsize(out_dtype))

    # Stay comfortably under v5e's 16 MiB scoped-VMEM default (and far under
    # v7x's 64 MiB physical VMEM).
    vmem_budget = 12 * 1024 * 1024
    G = _choose_num_steps(N, per_member_bytes, vmem_budget)
    Nb = N // G

    needed = 2 * Nb * per_member_bytes          # double-buffered in+out blocks
    vmem_limit = None
    if needed > vmem_budget:
        vmem_limit = min(int(needed * 1.25) + (1 << 20), 48 * 1024 * 1024)

    flops = 2 * N * B * D1 * D2 + N * B * D2    # matmul + bias add
    bytes_accessed = (x.size * itemsize(x.dtype)
                      + U.size * itemsize(U.dtype)
                      + bias.size * itemsize(bias.dtype)
                      + N * B * D2 * itemsize(out_dtype))

    return pl.pallas_call(
        _dense_baens_kernel,
        out_shape=jax.ShapeDtypeStruct((N, B, D2), out_dtype),
        grid=(G,),
        in_specs=[
            pl.BlockSpec((Nb, B, D1), lambda g: (g, 0, 0)),
            pl.BlockSpec((Nb, D1, D2), lambda g: (g, 0, 0)),
            pl.BlockSpec((Nb, B, D2), lambda g: (g, 0, 0)),
        ],
        out_specs=pl.BlockSpec((Nb, B, D2), lambda g: (g, 0, 0)),
        compiler_params=pltpu.CompilerParams(
            dimension_semantics=("parallel",),   # megacore / v7x 2nd TensorCore
            vmem_limit_bytes=vmem_limit,
        ),
        cost_estimate=pl.CostEstimate(
            flops=flops, transcendentals=0, bytes_accessed=bytes_accessed),
    )(x, U, bias)


def dense_baens_ref(x, U, bias):
    """Pure-JAX reference matching torch.bmm(x, U) + bias exactly."""
    return jnp.einsum('nbd,nde->nbe', x, U) + bias


if __name__ == "__main__":
    # Small shapes consistent with the module: N ensemble members, per-member
    # batch B, feature dims D1 -> D2.
    N, B, D1, D2 = 8, 16, 64, 32

    key = jax.random.PRNGKey(0)
    kx, ku, kb = jax.random.split(key, 3)
    x = jax.random.normal(kx, (N, B, D1), jnp.float32)
    U = 0.01 * jax.random.normal(ku, (N, D1, D2), jnp.float32)      # ~ normal(0, 0.01)
    bias = 0.01 * jax.random.normal(kb, (N, B, D2), jnp.float32)    # ~ normal(0, 0.01)

    ref = jax.block_until_ready(dense_baens_ref(x, U, bias))

    # f32 path: matches the torch baseline within tight tolerance.
    U_f32, bias_f32 = prepare_params(U, bias)
    out = jax.block_until_ready(dense_baens(x, U_f32, bias_f32))
    np.testing.assert_allclose(np.asarray(out), np.asarray(ref),
                               rtol=1e-5, atol=1e-5)

    # bf16-stored-weights path: halves the dominant HBM term (looser tolerance).
    U_bf16, bias_f32 = prepare_params(U, bias, weight_dtype=jnp.bfloat16)
    out_bf16 = jax.block_until_ready(dense_baens(x, U_bf16, bias_f32))
    np.testing.assert_allclose(np.asarray(out_bf16), np.asarray(ref),
                               rtol=5e-2, atol=5e-3)

    print("KERNEL_OK")
</pallas_src>

<mosaic_0001>
module attributes {stable_mosaic.version = 11 : i64} {
  func.func @_dense_baens_kernel(%arg0: i32, %arg1: memref<4x16x64xf32, #tpu.memory_space<vmem>>, %arg2: memref<4x64x32xf32, #tpu.memory_space<vmem>>, %arg3: memref<4x16x32xf32, #tpu.memory_space<vmem>>, %arg4: memref<4x16x32xf32, #tpu.memory_space<vmem>>) attributes {dimension_semantics = [#tpu.dimension_semantics<parallel>], iteration_bounds = array<i64: 2>, scalar_prefetch = 0 : i64, scratch_operands = 0 : i64, tpu.core_type = #tpu.core_type<tc>, window_params = [{transform_indices = @transform_0, window_bounds = array<i64: 4, 16, 64>}, {transform_indices = @transform_1, window_bounds = array<i64: 4, 64, 32>}, {transform_indices = @transform_2, window_bounds = array<i64: 4, 16, 32>}, {transform_indices = @transform_3, window_bounds = array<i64: 4, 16, 32>}]} {
    %c0 = arith.constant 0 : index
    %c0_0 = arith.constant 0 : index
    %c0_1 = arith.constant 0 : index
    %0 = vector.load %arg1[%c0, %c0_0, %c0_1] : memref<4x16x64xf32, #tpu.memory_space<vmem>>, vector<4x16x64xf32>
    %c0_2 = arith.constant 0 : index
    %c0_3 = arith.constant 0 : index
    %c0_4 = arith.constant 0 : index
    %1 = vector.load %arg2[%c0_2, %c0_3, %c0_4] : memref<4x64x32xf32, #tpu.memory_space<vmem>>, vector<4x64x32xf32>
    "tpu.trace_start"() <{level = 10 : i32, message = "nbd,nde->nbe"}> : () -> ()
    %cst = arith.constant dense<0.000000e+00> : vector<4x16x32xf32>
    %2 = tpu.matmul %0, %1, %cst {dimension_numbers = #tpu.dot_dimension_numbers<[2], [1], [1], [2], [0, 0, 0, 1, 1, 2], [0], [0]>} : vector<4x16x64xf32>, vector<4x64x32xf32>, vector<4x16x32xf32> -> vector<4x16x32xf32>
    "tpu.trace_stop"() : () -> ()
    %c0_5 = arith.constant 0 : index
    %c0_6 = arith.constant 0 : index
    %c0_7 = arith.constant 0 : index
    %3 = vector.load %arg3[%c0_5, %c0_6, %c0_7] : memref<4x16x32xf32, #tpu.memory_space<vmem>>, vector<4x16x32xf32>
    %4 = arith.addf %2, %3 : vector<4x16x32xf32>
    %c0_8 = arith.constant 0 : index
    %c0_9 = arith.constant 0 : index
    %c0_10 = arith.constant 0 : index
    %5 = vector.load %arg4[%c0_8, %c0_9, %c0_10] : memref<4x16x32xf32, #tpu.memory_space<vmem>>, vector<4x16x32xf32>
    tpu.vector_store %arg4[%c0_8, %c0_9, %c0_10], %4 {strides = array<i32>} : memref<4x16x32xf32, #tpu.memory_space<vmem>>, vector<4x16x32xf32>,
    return
  }
  func.func @transform_0(%arg0: i32) -> (i32, i32, i32) {
    %c0_i32 = arith.constant 0 : i32
    %c0_i32_0 = arith.constant 0 : i32
    %c0_i32_1 = arith.constant 0 : i32
    return %arg0, %c0_i32, %c0_i32_0 : i32, i32, i32
  }
  func.func @transform_1(%arg0: i32) -> (i32, i32, i32) {
    %c0_i32 = arith.constant 0 : i32
    %c0_i32_0 = arith.constant 0 : i32
    %c0_i32_1 = arith.constant 0 : i32
    return %arg0, %c0_i32, %c0_i32_0 : i32, i32, i32
  }
  func.func @transform_2(%arg0: i32) -> (i32, i32, i32) {
    %c0_i32 = arith.constant 0 : i32
    %c0_i32_0 = arith.constant 0 : i32
    %c0_i32_1 = arith.constant 0 : i32
    return %arg0, %c0_i32, %c0_i32_0 : i32, i32, i32
  }
  func.func @transform_3(%arg0: i32) -> (i32, i32, i32) {
    %c0_i32 = arith.constant 0 : i32
    %c0_i32_0 = arith.constant 0 : i32
    %c0_i32_1 = arith.constant 0 : i32
    return %arg0, %c0_i32, %c0_i32_0 : i32, i32, i32
  }
}

</mosaic_0001>

<bundles_post_ra>
// kernel: tpu_custom_call.1
= control target key start
LH: loop header
LB: loop body
LE: loop exit
PB: predicated region body
PF: predicated region fallthrough
CT: control target
= control target key end

     0   :  { %8 = vsyncpa [#allocation3], 0  ;;  %s1162_s0 = inlined_call_operand.vmem [shape: f32[8,16,64], index: 0, kind: input, shape index: {}]   ;;  %s1163_s1 = inlined_call_operand.vmem [shape: f32[8,64,32], index: 1, kind: input, shape index: {}]   ;;  %s1164_s2 = inlined_call_operand.vmem [shape: f32[8,16,32], index: 2, kind: input, shape index: {}]   ;;  %s1165_s3 = inlined_call_operand.hbm [shape: f32[8,16,32], index: 3, kind: output, shape index: {}]  }
   0x1   :  { %10 = vsyncpa [#allocation3 + $0x1], 0  ;;  %s983_s12 = smov 0   ;;  %s985_s13 = smov 0  }
   0x2   :  { %s987_s14 = smov 0   ;;  %s989_s15 = smov 0  }
   0x3 LB: > { %s1004_s16 = sadd.s32 4294967295, %s958_s15   ;;  %s708_s17 = sadd.s32 4294967294, %s958_s15   ;;  %s958_s15 = sphi %s989_s15, %s1171_s15   ;;  %s954_s14 = sphi %s987_s14, %s1170_s14   ;;  %s950_s13 = sphi %s985_s13, %s1169_s13   ;;  %s946_s12 = sphi %s983_s12, %s1168_s12  }
   0x4   : > { %s1008_s18 = sadd.s32 1, %s958_s15   ;;  %s101_s19 = sadd.s32 1, %s954_s14 }
   0x5   : > { %s98_s20 = ssub.s32 %s958_s15, %s1008_s18  ;;  %p111_p0 = scmp.ne.s32.totalorder %s954_s14, %s950_s13 }
   0x6   : > { %p99_p1 = scmp.eq.s32.totalorder %s98_s20, 0  ;;  %p112_p2 = scmp.eq.s32.totalorder %s1004_s16, 1 }
   0x7   : > { %p117_p3 = scmp.ne.s32.totalorder %s950_s13, %s946_s12  ;;  %p118_p4 = scmp.eq.s32.totalorder %s708_s17, 1 }
   0x8   : > { %s1019_s21 = scalar_select %p99_p1, %s954_s14, %s101_s19  }
   0x9   : > { %p1021_p5 = por %p112_p2, %p111_p0  ;;  %p1025_p6 = por %p118_p4, %p117_p3 }
   0xa   : > { %p711_p7 = scmp.ge.s32.totalorder %s958_s15, 1  ;;  %p166_p8 = scmp.lt.s32.totalorder %s958_s15, 3 }
   0xc   : > { %p167_p9 = pnand %p711_p7, %p166_p8 }
   0xd   : > { %s713_s24 = sshll.u32 (!%p167_p9), %s1004_s16, 2  ;;  %s200_s6 = sand.u32 (!%p167_p9), 1, %s950_s13  }
   0xe   : > { %170 = sbr.rel (%p167_p9) target bundleno = 270 (0x10e), region = 32  ;;  %p204_p10 = scmp.lt.s32.totalorder (!%p167_p9), %s713_s24, 7 }
   0xf   : > { %s712_s10 = sshll.u32 (!%p167_p9), %s200_s6, 6  ;;  %s740_s17 = sshll.u32 (!%p167_p9), %s1004_s16, 10 }
  0x10   : > { %s202_s11 = scalar_lea.vmem (!%p167_p9), [#allocation2], %s712_s10  ;;  %s1122_s16 = scalar_lea.sflag (!%p167_p9), [#allocation3], %s200_s6 }
  0x11   : > { %s622_s19 = sshll.u32 (!%p167_p9), %s202_s11, 4  ;;  %s960_s27 = smov (!%p167_p9), [#allocation2]   ;;  %s1114_s19 = int_to_ptr.vmem [resolvable:$true] %s622_s19 }
  0x12   : > { %s898_s26 = scalar_lea.vmem (!%p167_p9), %s1114_s19, 1024 }
  0x13   : > { %s1173_s24 = smov (!%p204_p10, %s713_s24), 7  ;;  %vm273_vm0 = vcmask 523264   ;;  %vm598_vm1 = vcmask 261120   ;;  %p899_p11 = scmp.ne.s32.totalorder %s1114_s19, %s898_s26 }
  0x14   : > { %s737_s25 = sshll.u32 %s1173_s24, 6  ;;  %s736_s29 = sshll.u32 %s1173_s24, 4 }
  0x15   : > { %s1038_s28 = scalar_lea.vmem %s1163_s1, %s737_s25  ;;  %s1060_s5 = scalar_lea.vmem %s1162_s0, %s736_s29 }
  0x16   : > { %v240_v0 = vld [vmem:[%s1038_s28 + $0x38] sm:$0xff]  ;;  %v239_v2 = vld [vmem:[%s1038_s28 + $0x30] sm:$0xff]  ;;  %v238_v4 = vld [vmem:[%s1038_s28 + $0x28] sm:$0xff]  ;;  %s222_s9 = scalar_lea.vmem %s1164_s2, %s736_s29  ;;  %s1112_s25 = scalar_lea.hbm %s1165_s3, %s740_s17 }
  0x17   : > { %v248_v1 = vld [vmem:[%s1038_s28 + $0x78] sm:$0xff]  ;;  %781 = vmatprep.subr.mxu0 %v240_v0  ;;  %v247_v3 = vld [vmem:[%s1038_s28 + $0x70] sm:$0xff]  ;;  %v246_v5 = vld [vmem:[%s1038_s28 + $0x68] sm:$0xff]  ;;  %p900_p12 = pnand %p899_p11, %p1021_p5 }
  0x18   : > { %800 = vmatprep.subr.mxu1 %v248_v1  ;;  %782 = vmatpush3.msra.mxu0 %v240_v0  ;;  %v237_v6 = vld [vmem:[%s1038_s28 + $0x20] sm:$0xff]  ;;  %v236_v8 = vld [vmem:[%s1038_s28 + $0x18] sm:$0xff]  ;;  %v235_v10 = vld [vmem:[%s1038_s28 + $0x10] sm:$0xff] }
  0x19   : > { %801 = vmatpush3.msra.mxu1 %v248_v1  ;;  %783 = vmatprep.subr.mxu0 %v239_v2  ;;  %v245_v7 = vld [vmem:[%s1038_s28 + $0x60] sm:$0xff]  ;;  %v244_v9 = vld [vmem:[%s1038_s28 + $0x58] sm:$0xff]  ;;  %v243_v11 = vld [vmem:[%s1038_s28 + $0x50] sm:$0xff]  ;;  %p901_p13 = pneg %p900_p12 }
  0x1a   : > { %802 = vmatprep.subr.mxu1 %v247_v3  ;;  %784 = vmatpush3.msra.mxu0 %v239_v2  ;;  %v234_v12 = vld [vmem:[%s1038_s28 + $0x8] sm:$0xff]  ;;  %v233_v14 = vld [vmem:[%s1038_s28] sm:$0xff]  ;;  %v227_v17 = vld [vmem:[%s1060_s5 + $0x10] sm:$0xff] }
  0x1b   : > { %803 = vmatpush3.msra.mxu1 %v247_v3  ;;  %785 = vmatprep.subr.mxu0 %v238_v4  ;;  %v242_v13 = vld [vmem:[%s1038_s28 + $0x48] sm:$0xff]  ;;  %v241_v15 = vld [vmem:[%s1038_s28 + $0x40] sm:$0xff]  ;;  %v228_v19 = vld [vmem:[%s1060_s5 + $0x18] sm:$0xff] }
  0x1c   : > { %804 = vmatprep.subr.mxu1 %v246_v5  ;;  %786 = vmatpush3.msra.mxu0 %v238_v4  ;;  %v225_v16 = vld [vmem:[%s1060_s5] sm:$0xff]  ;;  %v226_v18 = vld [vmem:[%s1060_s5 + $0x8] sm:$0xff]  ;;  %v256_v20 = vld [vmem:[%s1038_s28 + $0xb8] sm:$0xff] }
  0x1d   : > { %805 = vmatpush3.msra.mxu1 %v246_v5  ;;  %787 = vmatprep.subr.mxu0 %v237_v6  ;;  %v264_v21 = vld [vmem:[%s1038_s28 + $0xf8] sm:$0xff]  ;;  %v255_v22 = vld [vmem:[%s1038_s28 + $0xb0] sm:$0xff]  ;;  %v254_v24 = vld [vmem:[%s1038_s28 + $0xa8] sm:$0xff] }
  0x1e   : > { %806 = vmatprep.subr.mxu1 %v245_v7  ;;  %788 = vmatpush3.msra.mxu0 %v237_v6  ;;  %v263_v23 = vld [vmem:[%s1038_s28 + $0xf0] sm:$0xff]  ;;  %v262_v25 = vld [vmem:[%s1038_s28 + $0xe8] sm:$0xff]  ;;  %v253_v26 = vld [vmem:[%s1038_s28 + $0xa0] sm:$0xff] }
  0x1f   : > { %807 = vmatpush3.msra.mxu1 %v245_v7  ;;  %789 = vmatprep.subr.mxu0 %v236_v8  ;;  %v261_v27 = vld [vmem:[%s1038_s28 + $0xe0] sm:$0xff]  ;;  %v252_v28 = vld [vmem:[%s1038_s28 + $0x98] sm:$0xff]  ;;  %v251_v30 = vld [vmem:[%s1038_s28 + $0x90] sm:$0xff] }
  0x20   : > { %808 = vmatprep.subr.mxu1 %v244_v9  ;;  %790 = vmatpush3.msra.mxu0 %v236_v8  ;;  %v260_v29 = vld [vmem:[%s1038_s28 + $0xd8] sm:$0xff]  ;;  %v259_v31 = vld [vmem:[%s1038_s28 + $0xd0] sm:$0xff]  ;;  %v250_v32 = vld [vmem:[%s1038_s28 + $0x88] sm:$0xff] }
  0x21   : > { %809 = vmatpush3.msra.mxu1 %v244_v9  ;;  %791 = vmatprep.subr.mxu0 %v235_v10  ;;  %v258_v33 = vld [vmem:[%s1038_s28 + $0xc8] sm:$0xff]  ;;  %v249_v34 = vld [vmem:[%s1038_s28 + $0x80] sm:$0xff]  ;;  %v231_v37 = vld [vmem:[%s1060_s5 + $0x30] sm:$0xff] }
  0x22   : > { %810 = vmatprep.subr.mxu1 %v243_v11  ;;  %792 = vmatpush3.msra.mxu0 %v235_v10  ;;  %v257_v35 = vld [vmem:[%s1038_s28 + $0xc0] sm:$0xff]  ;;  %v230_v38 = vld [vmem:[%s1060_s5 + $0x28] sm:$0xff]  ;;  %v232_v39 = vld [vmem:[%s1060_s5 + $0x38] sm:$0xff]  ;;  %s902_s28 = sshll.u32 %s960_s27, 4  ;;  %s903_s28 = int_to_ptr.vmem [resolvable:$false] %s902_s28 }
  0x23   : > { %811 = vmatpush3.msra.mxu1 %v243_v11  ;;  %793 = vmatprep.subr.mxu0 %v234_v12  ;;  %v229_v36 = vld [vmem:[%s1060_s5 + $0x20] sm:$0xff]  ;;  %v266_v40 = vld [vmem:[%s222_s9 + $0x8] sm:$0xff]  ;;  %v268_v41 = vld [vmem:[%s222_s9 + $0x18] sm:$0xff]  ;;  %s904_s29 = scalar_lea.vmem %s903_s28, 2048  ;;  %p905_p0 = scmp.lt.s32.totalorder %s1114_s19, %s903_s28 }
  0x24   : > { %812 = vmatprep.subr.mxu1 %v242_v13  ;;  %794 = vmatpush3.msra.mxu0 %v234_v12  ;;  %v265_v44 = vld [vmem:[%s222_s9] sm:$0xff]  ;;  %v267_v45 = vld [vmem:[%s222_s9 + $0x10] sm:$0xff]  ;;  %v270_v52 = vld [vmem:[%s222_s9 + $0x28] sm:$0xff]  ;;  %p906_p1 = scmp.lt.s32.totalorder %s904_s29, %s898_s26 }
  0x25   : > { %813 = vmatpush3.msra.mxu1 %v242_v13  ;;  %795 = vmatprep.subr.mxu0 %v233_v14  ;;  %v272_v53 = vld [vmem:[%s222_s9 + $0x38] sm:$0xff]  ;;  %v269_v56 = vld [vmem:[%s222_s9 + $0x20] sm:$0xff]  ;;  %v271_v57 = vld [vmem:[%s222_s9 + $0x30] sm:$0xff] }
  0x26   : > { %814 = vmatprep.subr.mxu1 %v241_v15  ;;  %796 = vmatpush3.msra.mxu0 %v233_v14  ;;  %p907_p2 = por %p906_p1, %p905_p0 }
  0x27   : > { %797 = vmatprep.mubr.msk.f32.mxu0 %vm273_vm0, %v225_v16  ;;  %815 = vmatpush3.msra.mxu1 %v241_v15 }
  0x28   : > { %816 = vmatprep.mubr.msk.f32.mxu1 %vm273_vm0, %v227_v17  ;;  %798 = vmatmul.mubr.msk.f32.vlgmr.msra.gmra.mxu0 %vm273_vm0, %v226_v18  ;;  %p908_p3 = pnand %p907_p2, %p901_p13 }
  0x29   : > { %817 = vmatmul.mubr.msk.f32.vlgmr.msra.gmra.mxu1 %vm273_vm0, %v228_v19  ;;  %819 = vmatprep.subr.mxu0 %v256_v20 }
  0x2a   : > { %838 = vmatprep.subr.mxu1 %v264_v21  ;;  %820 = vmatpush3.msra.mxu0 %v256_v20 }
  0x2b   : > { %839 = vmatpush3.msra.mxu1 %v264_v21  ;;  %821 = vmatprep.subr.mxu0 %v255_v22 }
  0x2c   : > { %840 = vmatprep.subr.mxu1 %v263_v23  ;;  %822 = vmatpush3.msra.mxu0 %v255_v22 }
  0x2d   : > { %841 = vmatpush3.msra.mxu1 %v263_v23  ;;  %823 = vmatprep.subr.mxu0 %v254_v24 }
  0x2e   : > { %842 = vmatprep.subr.mxu1 %v262_v25  ;;  %824 = vmatpush3.msra.mxu0 %v254_v24 }
  0x2f   : > { %843 = vmatpush3.msra.mxu1 %v262_v25  ;;  %825 = vmatprep.subr.mxu0 %v253_v26 }
  0x30   : > { %844 = vmatprep.subr.mxu1 %v261_v27  ;;  %826 = vmatpush3.msra.mxu0 %v253_v26 }
  0x31   : > { %845 = vmatpush3.msra.mxu1 %v261_v27  ;;  %827 = vmatprep.subr.mxu0 %v252_v28 }
  0x32   : > { %846 = vmatprep.subr.mxu1 %v260_v29  ;;  %828 = vmatpush3.msra.mxu0 %v252_v28 }
  0x33   : > { %847 = vmatpush3.msra.mxu1 %v260_v29  ;;  %829 = vmatprep.subr.mxu0 %v251_v30 }
  0x34   : > { %848 = vmatprep.subr.mxu1 %v259_v31  ;;  %830 = vmatpush3.msra.mxu0 %v251_v30 }
  0x35   : > { %849 = vmatpush3.msra.mxu1 %v259_v31  ;;  %831 = vmatprep.subr.mxu0 %v250_v32 }
  0x36   : > { %850 = vmatprep.subr.mxu1 %v258_v33  ;;  %832 = vmatpush3.msra.mxu0 %v250_v32 }
  0x37   : > { %851 = vmatpush3.msra.mxu1 %v258_v33  ;;  %833 = vmatprep.subr.mxu0 %v249_v34 }
  0x38   : > { %852 = vmatprep.subr.mxu1 %v257_v35  ;;  %834 = vmatpush3.msra.mxu0 %v249_v34 }
  0x39   : > { %835 = vmatprep.mubr.msk.f32.mxu0 %vm273_vm0, %v229_v36  ;;  %853 = vmatpush3.msra.mxu1 %v257_v35 }
  0x3a   : > { %854 = vmatprep.mubr.msk.f32.mxu1 %vm273_vm0, %v231_v37  ;;  %836 = vmatmul.mubr.msk.f32.vlgmr.msra.gmra.mxu0 %vm273_vm0, %v230_v38 }
  0x3b   : > { %855 = vmatmul.mubr.msk.f32.vlgmr.msra.gmra.mxu1 %vm273_vm0, %v232_v39 }
  0xe8   : > { %v799_v42 = vpop.f32.mrf.mxu0 }
  0xe9   : > { %v818_v43 = vpop.f32.mrf.mxu1  ;;  %v352_v46 = vadd.f32 %v799_v42, %v266_v40 }
  0xea   : > { %v433_v47 = vadd.f32 %v818_v43, %v268_v41  ;;  %v346_v48 = vpop.f32.mrf.mxu0 }
  0xeb   : > { %v427_v49 = vpop.f32.mrf.mxu1  ;;  %600 = vst.msk [vmem:[%s202_s11 + $0x8] sm:$0xff] %vm598_vm1, %v352_v46  ;;  %v347_v50 = vadd.f32 %v346_v48, %v265_v44 }
  0xec   : > { %602 = vst.msk [vmem:[%s202_s11 + $0x18] sm:$0xff] %vm598_vm1, %v433_v47  ;;  %v428_v51 = vadd.f32 %v427_v49, %v267_v45 }
  0xed   : > { %599 = vst.msk [vmem:[%s202_s11] sm:$0xff] %vm598_vm1, %v347_v50 }
  0xee   : > { %601 = vst.msk [vmem:[%s202_s11 + $0x10] sm:$0xff] %vm598_vm1, %v428_v51 }
  0xfa   : > { %v837_v54 = vpop.f32.mrf.mxu0 }
  0xfb   : > { %v856_v55 = vpop.f32.mrf.mxu1  ;;  %v514_v58 = vadd.f32 %v837_v54, %v270_v52 }
  0xfc   : > { %v595_v59 = vadd.f32 %v856_v55, %v272_v53  ;;  %v508_v60 = vpop.f32.mrf.mxu0 }
  0xfd   : > { %v589_v61 = vpop.f32.mrf.mxu1  ;;  %604 = vst.msk [vmem:[%s202_s11 + $0x28] sm:$0xff] %vm598_vm1, %v514_v58  ;;  %v509_v62 = vadd.f32 %v508_v60, %v269_v56 }
  0xfe   : > { %606 = vst.msk [vmem:[%s202_s11 + $0x38] sm:$0xff] %vm598_vm1, %v595_v59  ;;  %v590_v63 = vadd.f32 %v589_v61, %v271_v57 }
  0xff   : > { %603 = vst.msk [vmem:[%s202_s11 + $0x20] sm:$0xff] %vm598_vm1, %v509_v62 }
 0x100   : > { %605 = vst.msk [vmem:[%s202_s11 + $0x30] sm:$0xff] %vm598_vm1, %v590_v63 }
 0x101   : > { %911 = shalt.err (!%p908_p3)
}
 0x102   : > { %s912_s30 = scalar_lea.hbm %s1112_s25, 1024  ;;  %s916_s6 = scalar_lea.hbm %s1165_s3, 2048 }
 0x103   : > { %p913_p4 = scmp.ne.s32.totalorder %s1112_s25, %s912_s30  ;;  %p917_p9 = scmp.lt.s32.totalorder %s1112_s25, %s1165_s3 }
 0x104   : > { %p918_p10 = scmp.lt.s32.totalorder %s916_s6, %s912_s30 }
 0x105   : > { %p914_p7 = pnand %p913_p4, %p1021_p5 }
 0x106   : > { %p919_p11 = por %p918_p10, %p917_p9 }
 0x107   : > { %p915_p8 = pneg %p914_p7 }
 0x109   : > { %p920_p12 = pnand %p919_p11, %p915_p8 }
 0x10b   : > { %923 = shalt.err (!%p920_p12)
}
 0x10c   : > { %s961_s9 = smov 128   ;;  %s962_s10 = smov 8  }
 0x10d   : > { %857 = dma.vmem_to_hbm [thread:$0]  (%p1021_p5), %s1114_s19, 1024, %s1112_s25, %s1122_s16, %s961_s9, %s961_s9, %s962_s10  }
 0x10e PF: > { %p863_p13 = scmp.ge.s32.totalorder %s958_s15, 2  ;;  %s637_s11 = sand.u32 1, %s946_s12  }
 0x10f   : > { %s638_s17 = scalar_lea.sflag [#allocation3], %s637_s11 }
 0x110   : > { %p860_p0 = pnand %p863_p13, %p1025_p6 }
 0x112   : > { %p861_p1 = pneg %p860_p0 }
 0x114   : > { %941 = dma.done.wait (%p861_p1), %s638_s17, 1024  }
 0x115   : > { %943 = vsyncadd (%p861_p1), %s638_s17, 4294966272  ;;  %p13_p2 = scmp.ge.s32.totalorder %s1008_s18, 4   ;;  %s1168_s12 = smov %s950_s13 }
 0x116   : > { %s1169_s13 = smov %s954_s14  ;;  %s1170_s14 = smov %s1019_s21 }
 0x117   : > { %s1171_s15 = smov %s1008_s18  ;;  %15 = sbr.rel (!%p13_p2) target bundleno = 3 (0x3), region = 73 }
 0x11c   :  { %643 = vsyncpa [#allocation3], 1 }
 0x11d   :  { %645 = vsyncpa [#allocation3 + $0x1], 1 }

</bundles_post_ra>
